<compile_context>
chip_gen: v6e
topology: v6e:2x2x1
jax: 0.10.0
libtpu: 0.0.40
codegen_flags: <defaults>
</compile_context>

<pallas_src>
import math

import jax
import jax.numpy as jnp
import numpy as np
from jax.experimental import pallas as pl
from jax.experimental.pallas import tpu as pltpu


# ----------------------------------------------------------------------------
# Pallas kernel: the entire multi-layer GRU cell in one straight-line block.
# ----------------------------------------------------------------------------
def fused_multilayer_gru_kernel(x_ref, h_ref, w_ref, b_ref, out_ref):
    """All L GRU layers fused into a single MXU matmul + one VPU/EUP epilogue.

    x_ref  : [B, Din]          layer-0 input
    h_ref  : [L, B, H]         input hidden states (layer l>0 consumes h[l-1])
    w_ref  : [Din+L*H, 4*L*H]  column-stacked weights (bf16 or f32),
                               gate-major column blocks [r | z | i_n | h_n]
    b_ref  : [1, 4*L*H]        fused f32 bias matching the column layout
    out_ref: [L, B, H]         new hidden state stack
    """
    L, B, H = out_ref.shape
    G = L * H

    # Column-stack activations in VMEM: [x0 | h0 | ... | h_{L-1}]  -> [B, Din+G]
    h_cat = jnp.concatenate([h_ref[l] for l in range(L)], axis=-1)      # [B, G]
    a = jnp.concatenate([x_ref[...], h_cat], axis=-1)                   # [B, Din+G]

    # Single MXU pass, f32 accumulation.  Casting `a` to the weight dtype makes
    # the bf16 path a native bf16 matmul; it's a no-op for f32 weights.
    g = jnp.dot(a.astype(w_ref.dtype), w_ref[...],
                preferred_element_type=jnp.float32) + b_ref[...]        # [B, 4G]

    r = jax.nn.sigmoid(g[:, 0:G])                                       # reset
    z = jax.nn.sigmoid(g[:, G:2 * G])                                   # update
    n = jnp.tanh(g[:, 2 * G:3 * G] + r * g[:, 3 * G:4 * G])             # candidate
    h_new = (1.0 - z) * n + z * h_cat                                   # [B, G]

    for l in range(L):
        out_ref[l] = h_new[:, l * H:(l + 1) * H].astype(out_ref.dtype)


# ----------------------------------------------------------------------------
# Wrapper: exact port of MultiLayer_GRU_Cell.forward, one pallas_call, no grid.
# ----------------------------------------------------------------------------
def multilayer_gru_cell_forward(w_packed, b_packed, gru_input,
                                gru_hidden_state_input):
    """Returns (gru_hidden_state[-1], gru_hidden_state) like the PyTorch module."""
    L, B, H = gru_hidden_state_input.shape

    new_h = pl.pallas_call(
        fused_multilayer_gru_kernel,
        out_shape=jax.ShapeDtypeStruct((L, B, H), jnp.float32),
        in_specs=[pl.BlockSpec(memory_space=pltpu.MemorySpace.VMEM)] * 4,
        out_specs=pl.BlockSpec(memory_space=pltpu.MemorySpace.VMEM),
    )(gru_input, gru_hidden_state_input, w_packed, b_packed)

    return new_h[L - 1], new_h


# ----------------------------------------------------------------------------
# Parameter construction (PyTorch nn.GRUCell layout) + one-time fusion packing.
# ----------------------------------------------------------------------------
def init_multilayer_gru_params(key, input_size, hidden_size, num_layers):
    """nn.GRUCell-style params: U(-1/sqrt(H), 1/sqrt(H)), gate order (r, z, n)."""
    params = []
    layer_input_size = input_size
    bound = 1.0 / math.sqrt(hidden_size)
    for _ in range(num_layers):
        key, k1, k2, k3, k4 = jax.random.split(key, 5)
        w_ih = jax.random.uniform(k1, (3 * hidden_size, layer_input_size),
                                  jnp.float32, -bound, bound)
        w_hh = jax.random.uniform(k2, (3 * hidden_size, hidden_size),
                                  jnp.float32, -bound, bound)
        b_ih = jax.random.uniform(k3, (3 * hidden_size,), jnp.float32, -bound, bound)
        b_hh = jax.random.uniform(k4, (3 * hidden_size,), jnp.float32, -bound, bound)
        params.append((w_ih, w_hh, b_ih, b_hh))
        layer_input_size = hidden_size
    return params


def pack_gru_params(raw_params, input_size, hidden_size,
                    weight_dtype=jnp.bfloat16):
    """Column-stack per-layer params into one fused weight + bias.

    Returns
      W : [Din + L*H, 4*L*H]  (weight_dtype)   gate-major columns [r|z|i_n|h_n],
                              layer l occupying cols [l*H, (l+1)*H) inside each
                              gate block.  Row block of x_l (layer 0: gru_input,
                              layer l>0: h_{l-1}) and of h_l carry the ih / hh
                              contributions; cross blocks stay zero so the
                              n-gate keeps PyTorch's  n = tanh(i_n + r*h_n)  form.
      b : [1, 4*L*H]          (f32)  [b_ir+b_hr | b_iz+b_hz | b_in | b_hn]
    """
    H = hidden_size
    L = len(raw_params)
    G = L * H
    Din = input_size
    K = Din + L * H
    W = np.zeros((K, 4 * G), np.float32)
    b = np.zeros((1, 4 * G), np.float32)

    for l, (w_ih, w_hh, b_ih, b_hh) in enumerate(raw_params):
        w_ih = np.asarray(w_ih); w_hh = np.asarray(w_hh)
        b_ih = np.asarray(b_ih); b_hh = np.asarray(b_hh)
        # rows for this layer's input x_l and hidden h_l inside A = [x0|h0|...|h_{L-1}]
        xr = slice(0, Din) if l == 0 else slice(Din + (l - 1) * H, Din + l * H)
        hr = slice(Din + l * H, Din + (l + 1) * H)
        cols = lambda gate: slice(gate * G + l * H, gate * G + (l + 1) * H)

        W[xr, cols(0)] = w_ih[0:H].T            # r, ih part
        W[hr, cols(0)] = w_hh[0:H].T            # r, hh part
        W[xr, cols(1)] = w_ih[H:2 * H].T        # z, ih part
        W[hr, cols(1)] = w_hh[H:2 * H].T        # z, hh part
        W[xr, cols(2)] = w_ih[2 * H:3 * H].T    # i_n
        W[hr, cols(3)] = w_hh[2 * H:3 * H].T    # h_n

        b[0, cols(0)] = b_ih[0:H] + b_hh[0:H]
        b[0, cols(1)] = b_ih[H:2 * H] + b_hh[H:2 * H]
        b[0, cols(2)] = b_ih[2 * H:3 * H]
        b[0, cols(3)] = b_hh[2 * H:3 * H]

    return jnp.asarray(W, weight_dtype), jnp.asarray(b, jnp.float32)


# ----------------------------------------------------------------------------
# Pure-JAX reference (unfused, PyTorch layout) for numerical verification.
# ----------------------------------------------------------------------------
def _gru_cell_reference(x, h, w_ih, w_hh, b_ih, b_hh):
    H = h.shape[-1]
    gi = jnp.dot(x, w_ih.T, precision="highest") + b_ih
    gh = jnp.dot(h, w_hh.T, precision="highest") + b_hh
    r = jax.nn.sigmoid(gi[:, :H] + gh[:, :H])
    z = jax.nn.sigmoid(gi[:, H:2 * H] + gh[:, H:2 * H])
    n = jnp.tanh(gi[:, 2 * H:] + r * gh[:, 2 * H:])
    return (1.0 - z) * n + z * h


def multilayer_gru_reference(raw_params, gru_input, gru_hidden_state_input):
    L = len(raw_params)
    layer_input = gru_input
    hs = []
    for layer in range(L):
        hs.append(_gru_cell_reference(layer_input, gru_hidden_state_input[layer],
                                      *raw_params[layer]))
        layer_input = gru_hidden_state_input[layer]   # the PyTorch quirk
    hs = jnp.stack(hs, axis=0)
    return hs[L - 1], hs


if __name__ == "__main__":
    batch, input_size, hidden_size, num_layers = 8, 16, 32, 3

    key = jax.random.PRNGKey(0)
    kp, kx, kh = jax.random.split(key, 3)

    raw_params = init_multilayer_gru_params(kp, input_size, hidden_size, num_layers)
    gru_input = jax.random.normal(kx, (batch, input_size), jnp.float32)
    gru_hidden_state_input = jax.random.normal(
        kh, (num_layers, batch, hidden_size), jnp.float32)

    fwd = jax.jit(multilayer_gru_cell_forward)

    # --- f32 weights: tight numerical check vs pure-JAX reference ----------
    w32, b32 = pack_gru_params(raw_params, input_size, hidden_size, jnp.float32)
    last32, all32 = fwd(w32, b32, gru_input, gru_hidden_state_input)
    jax.block_until_ready((last32, all32))
    ref_last, ref_all = multilayer_gru_reference(raw_params, gru_input,
                                                 gru_hidden_state_input)
    np.testing.assert_allclose(np.asarray(all32), np.asarray(ref_all),
                               atol=1e-4, rtol=1e-4)
    np.testing.assert_allclose(np.asarray(last32), np.asarray(ref_last),
                               atol=1e-4, rtol=1e-4)

    # --- bf16 weights (default perf config): bf16-rounded reference --------
    wbf, bbf = pack_gru_params(raw_params, input_size, hidden_size, jnp.bfloat16)
    lastbf, allbf = fwd(wbf, bbf, gru_input, gru_hidden_state_input)
    jax.block_until_ready((lastbf, allbf))
    rounded_params = [(w_ih.astype(jnp.bfloat16).astype(jnp.float32),
                       w_hh.astype(jnp.bfloat16).astype(jnp.float32),
                       b_ih, b_hh)
                      for (w_ih, w_hh, b_ih, b_hh) in raw_params]
    refb_last, refb_all = multilayer_gru_reference(rounded_params, gru_input,
                                                   gru_hidden_state_input)
    np.testing.assert_allclose(np.asarray(allbf), np.asarray(refb_all),
                               atol=2e-2, rtol=2e-2)
    np.testing.assert_allclose(np.asarray(lastbf), np.asarray(refb_last),
                               atol=2e-2, rtol=2e-2)

    assert lastbf.shape == (batch, hidden_size)
    assert allbf.shape == (num_layers, batch, hidden_size)

    print("KERNEL_OK")
</pallas_src>

<mosaic_0001>
module attributes {stable_mosaic.version = 11 : i64} {
  func.func @fused_multilayer_gru_kernel(%arg0: memref<8x16xf32, #tpu.memory_space<vmem>>, %arg1: memref<3x8x32xf32, #tpu.memory_space<vmem>>, %arg2: memref<112x384xf32, #tpu.memory_space<vmem>>, %arg3: memref<1x384xf32, #tpu.memory_space<vmem>>, %arg4: memref<3x8x32xf32, #tpu.memory_space<vmem>>) attributes {dimension_semantics = [], scalar_prefetch = 0 : i64, scratch_operands = 0 : i64, tpu.core_type = #tpu.core_type<tc>} {
    %c0 = arith.constant 0 : index
    %c0_0 = arith.constant 0 : index
    %c0_1 = arith.constant 0 : index
    %0 = vector.load %arg1[%c0, %c0_0, %c0_1] : memref<3x8x32xf32, #tpu.memory_space<vmem>>, vector<1x8x32xf32>
    %1 = vector.shape_cast %0 : vector<1x8x32xf32> to vector<8x32xf32>
    %c1 = arith.constant 1 : index
    %c0_2 = arith.constant 0 : index
    %c0_3 = arith.constant 0 : index
    %2 = vector.load %arg1[%c1, %c0_2, %c0_3] : memref<3x8x32xf32, #tpu.memory_space<vmem>>, vector<1x8x32xf32>
    %3 = vector.shape_cast %2 : vector<1x8x32xf32> to vector<8x32xf32>
    %c2 = arith.constant 2 : index
    %c0_4 = arith.constant 0 : index
    %c0_5 = arith.constant 0 : index
    %4 = vector.load %arg1[%c2, %c0_4, %c0_5] : memref<3x8x32xf32, #tpu.memory_space<vmem>>, vector<1x8x32xf32>
    %5 = vector.shape_cast %4 : vector<1x8x32xf32> to vector<8x32xf32>
    %6 = tpu.concatenate %1, %3, %5 in 1 : vector<8x32xf32>, vector<8x32xf32>, vector<8x32xf32> -> vector<8x96xf32>
    %c0_6 = arith.constant 0 : index
    %c0_7 = arith.constant 0 : index
    %7 = vector.load %arg0[%c0_6, %c0_7] : memref<8x16xf32, #tpu.memory_space<vmem>>, vector<8x16xf32>
    %8 = tpu.concatenate %7, %6 in 1 : vector<8x16xf32>, vector<8x96xf32> -> vector<8x112xf32>
    %c0_8 = arith.constant 0 : index
    %c0_9 = arith.constant 0 : index
    %9 = vector.load %arg2[%c0_8, %c0_9] : memref<112x384xf32, #tpu.memory_space<vmem>>, vector<112x384xf32>
    %cst = arith.constant dense<0.000000e+00> : vector<8x384xf32>
    %10 = tpu.matmul %8, %9, %cst {dimension_numbers = #tpu.dot_dimension_numbers<[1], [0], [0], [1], [0, 0, 1, 1], [], []>} : vector<8x112xf32>, vector<112x384xf32>, vector<8x384xf32> -> vector<8x384xf32>
    %c0_10 = arith.constant 0 : index
    %c0_11 = arith.constant 0 : index
    %11 = vector.load %arg3[%c0_10, %c0_11] : memref<1x384xf32, #tpu.memory_space<vmem>>, vector<1x384xf32>
    %12 = vector.broadcast %11 : vector<1x384xf32> to vector<8x384xf32>
    %13 = arith.addf %10, %12 : vector<8x384xf32>
    %14 = vector.extract_strided_slice %13 {offsets = [0, 0], sizes = [8, 96], strides = [1, 1]} : vector<8x384xf32> to vector<8x96xf32>
    %15 = arith.negf %14 : vector<8x96xf32>
    %16 = math.exp %15 : vector<8x96xf32>
    %cst_12 = arith.constant 1.000000e+00 : f32
    %17 = vector.broadcast %cst_12 : f32 to vector<8x96xf32>
    %18 = arith.addf %17, %16 : vector<8x96xf32>
    %19 = arith.divf %17, %18 : vector<8x96xf32>
    %20 = vector.extract_strided_slice %13 {offsets = [0, 96], sizes = [8, 96], strides = [1, 1]} : vector<8x384xf32> to vector<8x96xf32>
    %21 = arith.negf %20 : vector<8x96xf32>
    %22 = math.exp %21 : vector<8x96xf32>
    %cst_13 = arith.constant 1.000000e+00 : f32
    %23 = vector.broadcast %cst_13 : f32 to vector<8x96xf32>
    %24 = arith.addf %23, %22 : vector<8x96xf32>
    %25 = arith.divf %23, %24 : vector<8x96xf32>
    %26 = vector.extract_strided_slice %13 {offsets = [0, 192], sizes = [8, 96], strides = [1, 1]} : vector<8x384xf32> to vector<8x96xf32>
    %27 = vector.extract_strided_slice %13 {offsets = [0, 288], sizes = [8, 96], strides = [1, 1]} : vector<8x384xf32> to vector<8x96xf32>
    %28 = arith.mulf %19, %27 : vector<8x96xf32>
    %29 = arith.addf %26, %28 : vector<8x96xf32>
    %30 = math.tanh %29 : vector<8x96xf32>
    %cst_14 = arith.constant 1.000000e+00 : f32
    %31 = vector.broadcast %cst_14 : f32 to vector<8x96xf32>
    %32 = arith.subf %31, %25 : vector<8x96xf32>
    %33 = arith.mulf %32, %30 : vector<8x96xf32>
    %34 = arith.mulf %25, %6 : vector<8x96xf32>
    %35 = arith.addf %33, %34 : vector<8x96xf32>
    %36 = vector.extract_strided_slice %35 {offsets = [0, 0], sizes = [8, 32], strides = [1, 1]} : vector<8x96xf32> to vector<8x32xf32>
    %c0_15 = arith.constant 0 : index
    %c0_16 = arith.constant 0 : index
    %c0_17 = arith.constant 0 : index
    %37 = vector.load %arg4[%c0_15, %c0_16, %c0_17] : memref<3x8x32xf32, #tpu.memory_space<vmem>>, vector<1x8x32xf32>
    %38 = vector.shape_cast %37 : vector<1x8x32xf32> to vector<8x32xf32>
    %39 = vector.shape_cast %36 : vector<8x32xf32> to vector<1x8x32xf32>
    tpu.vector_store %arg4[%c0_15, %c0_16, %c0_17], %39 {strides = array<i32>} : memref<3x8x32xf32, #tpu.memory_space<vmem>>, vector<1x8x32xf32>,
    %40 = vector.extract_strided_slice %35 {offsets = [0, 32], sizes = [8, 32], strides = [1, 1]} : vector<8x96xf32> to vector<8x32xf32>
    %c1_18 = arith.constant 1 : index
    %c0_19 = arith.constant 0 : index
    %c0_20 = arith.constant 0 : index
    %41 = vector.load %arg4[%c1_18, %c0_19, %c0_20] : memref<3x8x32xf32, #tpu.memory_space<vmem>>, vector<1x8x32xf32>
    %42 = vector.shape_cast %41 : vector<1x8x32xf32> to vector<8x32xf32>
    %43 = vector.shape_cast %40 : vector<8x32xf32> to vector<1x8x32xf32>
    tpu.vector_store %arg4[%c1_18, %c0_19, %c0_20], %43 {strides = array<i32>} : memref<3x8x32xf32, #tpu.memory_space<vmem>>, vector<1x8x32xf32>,
    %44 = vector.extract_strided_slice %35 {offsets = [0, 64], sizes = [8, 32], strides = [1, 1]} : vector<8x96xf32> to vector<8x32xf32>
    %c2_21 = arith.constant 2 : index
    %c0_22 = arith.constant 0 : index
    %c0_23 = arith.constant 0 : index
    %45 = vector.load %arg4[%c2_21, %c0_22, %c0_23] : memref<3x8x32xf32, #tpu.memory_space<vmem>>, vector<1x8x32xf32>
    %46 = vector.shape_cast %45 : vector<1x8x32xf32> to vector<8x32xf32>
    %47 = vector.shape_cast %44 : vector<8x32xf32> to vector<1x8x32xf32>
    tpu.vector_store %arg4[%c2_21, %c0_22, %c0_23], %47 {strides = array<i32>} : memref<3x8x32xf32, #tpu.memory_space<vmem>>, vector<1x8x32xf32>,
    return
  }
}

</mosaic_0001>

<bundles_post_ra>
// kernel: multilayer_gru_cell_forward.1
= control target key start
LH: loop header
LB: loop body
LE: loop exit
PB: predicated region body
PF: predicated region fallthrough
CT: control target
= control target key end

     0   :  { %9 = vsyncpa [#allocation3], 0  ;;  %s615_s0 = inlined_call_operand.hbm [shape: f32[8,16], index: 0, kind: input, shape index: {}]   ;;  %s616_s1 = inlined_call_operand.hbm [shape: f32[3,8,32], index: 1, kind: input, shape index: {}]   ;;  %s617_s2 = inlined_call_operand.hbm [shape: f32[112,384], index: 2, kind: input, shape index: {}]   ;;  %s618_s3 = inlined_call_operand.hbm [shape: f32[1,384], index: 3, kind: input, shape index: {}]   ;;  %s619_s4 = inlined_call_operand.vmem [shape: f32[3,8,32], index: 4, kind: output, shape index: {}]  }
   0x1   :  { %10 = vsyncpa [#allocation5], 0 }
   0x2   :  { %11 = vsyncpa [#allocation8], 0  ;;  %s525_s15 = smov [#allocation4]  }
   0x3   :  { %s27_s16 = sshll.u32 %s525_s15, 4  ;;  %s28_s16 = int_to_ptr.vmem [resolvable:$true] %s27_s16 }
   0x4   :  { %s447_s17 = scalar_lea.vmem %s28_s16, 384  ;;  %p452_p1 = scmp.lt.s32.totalorder %s28_s16, %s28_s16 }
   0x5   :  { %p448_p0 = scmp.ne.s32.totalorder %s28_s16, %s447_s17  ;;  %p453_p2 = scmp.lt.s32.totalorder %s447_s17, %s447_s17 }
   0x7   :  { %p454_p3 = por %p453_p2, %p452_p1 }
   0x9   :  { %p455_p4 = pnand %p454_p3, %p448_p0 }
   0xb   :  { %458 = shalt.err (!%p455_p4)
}
   0xc   :  { %s526_s18 = smov 128   ;;  %s527_s19 = smov 8  }
   0xd   :  { %33 = dma.hbm_to_vmem [thread:$0]  %s616_s1, 384, %s28_s16, [#allocation5], %s526_s18, %s526_s18, %s527_s19  }
   0xe   :  { %s528_s22 = smov [#allocation2]   ;;  %s529_s24 = smov [#allocation6]  }
   0xf   :  { %s18_s23 = sshll.u32 %s528_s22, 4  ;;  %s39_s25 = sshll.u32 %s529_s24, 4  ;;  %s19_s23 = int_to_ptr.vmem [resolvable:$true] %s18_s23  ;;  %s40_s25 = int_to_ptr.vmem [resolvable:$true] %s39_s25 }
  0x10   :  { %s467_s26 = scalar_lea.vmem %s19_s23, 128  ;;  %p472_p6 = scmp.lt.s32.totalorder %s19_s23, %s19_s23 }
  0x11   :  { %p468_p5 = scmp.ne.s32.totalorder %s19_s23, %s467_s26  ;;  %p473_p7 = scmp.lt.s32.totalorder %s467_s26, %s467_s26 }
  0x13   :  { %p474_p8 = por %p473_p7, %p472_p6 }
  0x15   :  { %p475_p9 = pnand %p474_p8, %p468_p5 }
  0x17   :  { %478 = shalt.err (!%p475_p9)
}
  0x18   :  { %21 = dma.hbm_to_vmem [thread:$0]  %s615_s0, 128, %s19_s23, [#allocation3]  }
  0x19   :  { %s487_s29 = scalar_lea.vmem %s40_s25, 5376  ;;  %p492_p11 = scmp.lt.s32.totalorder %s40_s25, %s40_s25 }
  0x1a   :  { %p488_p10 = scmp.ne.s32.totalorder %s40_s25, %s487_s29  ;;  %p493_p12 = scmp.lt.s32.totalorder %s487_s29, %s487_s29 }
  0x1c   :  { %p494_p13 = por %p493_p12, %p492_p11 }
  0x1e   :  { %p495_p0 = pnand %p494_p13, %p488_p10 }
  0x20   :  { %498 = shalt.err (!%p495_p0)
}
  0x21   :  { %s530_s1 = smov 384   ;;  %s531_s30 = smov 24  }
  0x22   :  { %45 = dma.hbm_to_vmem [thread:$0]  %s617_s2, 5376, %s40_s25, [#allocation5], %s530_s1, %s530_s1, %s531_s30  }
  0x23   :  { %s532_s7 = smov [#allocation7]  }
  0x24   :  { %s52_s8 = sshll.u32 %s532_s7, 4  ;;  %s53_s8 = int_to_ptr.vmem [resolvable:$true] %s52_s8 }
  0x25   :  { %s507_s9 = scalar_lea.vmem %s53_s8, 48  ;;  %s511_s0 = scalar_lea.vmem %s53_s8, 64 }
  0x26   :  { %p508_p1 = scmp.ne.s32.totalorder %s53_s8, %s507_s9  ;;  %p512_p2 = scmp.lt.s32.totalorder %s53_s8, %s53_s8 }
  0x27   :  { %p513_p3 = scmp.lt.s32.totalorder %s511_s0, %s507_s9 }
  0x29   :  { %p514_p4 = por %p513_p3, %p512_p2 }
  0x2b   :  { %p515_p5 = pnand %p514_p4, %p508_p1 }
  0x2d   :  { %518 = shalt.err (!%p515_p5)
}
  0x2e   :  { %55 = dma.hbm_to_vmem [thread:$0]  %s618_s3, 48, %s53_s8, [#allocation8]  }
  0x2f   :  { %519 = dma.done.wait [#allocation3], 128  }
  0x30   :  { %520 = vsyncadd [#allocation3], 4294967168 }
  0x31   :  { %521 = dma.done.wait [#allocation5], 5760  }
  0x32   :  { %522 = vsyncadd [#allocation5], 4294961536 }
  0x33   :  { %523 = dma.done.wait [#allocation8], 48  }
  0x34   :  { %524 = vsyncadd [#allocation8], 4294967248  ;;  %v533_v0 = vmov 0.0   ;;  %v70_v1 = vld [vmem:[#allocation4 + $0x8] sm:$0xff]  ;;  %v72_v2 = vld [vmem:[#allocation4 + $0x10] sm:$0xff]  ;;  %s534_s2 = smov 32   ;;  %v136_v53 = vlaneseq }
  0x35   :  { %382 = vmatprep.subr.mxu1 %v533_v0  ;;  %219 = vmatprep.mubr.f32.mxu0 %v533_v0  ;;  %v132_v3 = vld [vmem:[#allocation6 + $0x140] sm:$0xff]  ;;  %v131_v4 = vld [vmem:[#allocation6 + $0x138] sm:$0xff]  ;;  %v133_v5 = vld [vmem:[#allocation6 + $0x148] sm:$0xff]  ;;  %s535_s3 = smov 64   ;;  %vm536_vm0 = vmmov 0   ;;  %vm81_vm1 = vcmask 261120  }
  0x36   :  { %74 = vrot.lane.b32.xlu0 %v70_v1, %s534_s2  ;;  %159 = vmatprep.subr.mxu0 %v132_v3  ;;  %v129_v6 = vld [vmem:[#allocation6 + $0x128] sm:$0xff]  ;;  %v128_v7 = vld [vmem:[#allocation6 + $0x120] sm:$0xff]  ;;  %v130_v8 = vld [vmem:[#allocation6 + $0x130] sm:$0xff]  ;;  %vm83_vm2 = vcmask 523264   ;;  %s537_s12 = smov 16   ;;  %vm90_vm3 = vcmask 130048  }
  0x37   :  { %383 = vmatpush3.msra.mxu1 %v133_v5  ;;  %160 = vmatpush1.msra.mxu0 %v131_v4  ;;  %v126_v9 = vld [vmem:[#allocation6 + $0x110] sm:$0xff]  ;;  %v125_v10 = vld [vmem:[#allocation6 + $0x108] sm:$0xff]  ;;  %v127_v11 = vld [vmem:[#allocation6 + $0x118] sm:$0xff]  ;;  %vm151_vm4 = vcmask 916480   ;;  %v137_v54 = vshrl.u32 %v136_v53, 7  ;;  %s538_s13 = smov 96  }
  0x38   :  { %384 = vmatprep.subr.mxu1 %v533_v0  ;;  %161 = vmatprep.subr.mxu0 %v129_v6  ;;  %v123_v12 = vld [vmem:[#allocation6 + $0xf8] sm:$0xff]  ;;  %v122_v13 = vld [vmem:[#allocation6 + $0xf0] sm:$0xff]  ;;  %v124_v14 = vld [vmem:[#allocation6 + $0x100] sm:$0xff] }
  0x39   :  { %385 = vmatpush3.msra.mxu1 %v130_v8  ;;  %162 = vmatpush1.msra.mxu0 %v128_v7  ;;  %v120_v15 = vld [vmem:[#allocation6 + $0xe0] sm:$0xff]  ;;  %v119_v16 = vld [vmem:[#allocation6 + $0xd8] sm:$0xff]  ;;  %v121_v17 = vld [vmem:[#allocation6 + $0xe8] sm:$0xff]  ;;  %v146_v55 = vsub.s32 2, %v137_v54  ;;  %v138_v61 = vsub.s32 0, %v137_v54  ;;  %v142_v7 = vsub.s32 1, %v137_v54 }
  0x3a   :  { %78 = vrot.lane.b32.xlu0 %v72_v2, %s535_s3  ;;  %163 = vmatprep.subr.mxu0 %v126_v9  ;;  %v117_v18 = vld [vmem:[#allocation6 + $0xc8] sm:$0xff]  ;;  %v116_v19 = vld [vmem:[#allocation6 + $0xc0] sm:$0xff]  ;;  %v118_v20 = vld [vmem:[#allocation6 + $0xd0] sm:$0xff] }
  0x3b   :  { %386 = vmatprep.subr.mxu1 %v533_v0  ;;  %164 = vmatpush1.msra.mxu0 %v125_v10  ;;  %v114_v21 = vld [vmem:[#allocation6 + $0xb0] sm:$0xff]  ;;  %v113_v22 = vld [vmem:[#allocation6 + $0xa8] sm:$0xff]  ;;  %v115_v23 = vld [vmem:[#allocation6 + $0xb8] sm:$0xff] }
  0x3c   :  { %387 = vmatpush3.msra.mxu1 %v127_v11  ;;  %165 = vmatprep.subr.mxu0 %v123_v12  ;;  %v111_v24 = vld [vmem:[#allocation6 + $0x98] sm:$0xff]  ;;  %v110_v25 = vld [vmem:[#allocation6 + $0x90] sm:$0xff]  ;;  %v112_v26 = vld [vmem:[#allocation6 + $0xa0] sm:$0xff] }
  0x3d   :  { %388 = vmatprep.subr.mxu1 %v533_v0  ;;  %166 = vmatpush1.msra.mxu0 %v122_v13  ;;  %v108_v27 = vld [vmem:[#allocation6 + $0x80] sm:$0xff]  ;;  %v107_v28 = vld [vmem:[#allocation6 + $0x78] sm:$0xff]  ;;  %v109_v29 = vld [vmem:[#allocation6 + $0x88] sm:$0xff] }
  0x3e   :  { %389 = vmatpush3.msra.mxu1 %v124_v14  ;;  %167 = vmatprep.subr.mxu0 %v120_v15  ;;  %v105_v30 = vld [vmem:[#allocation6 + $0x68] sm:$0xff]  ;;  %v104_v31 = vld [vmem:[#allocation6 + $0x60] sm:$0xff]  ;;  %v106_v32 = vld [vmem:[#allocation6 + $0x70] sm:$0xff] }
  0x3f   :  { %390 = vmatprep.subr.mxu1 %v533_v0  ;;  %168 = vmatpush1.msra.mxu0 %v119_v16  ;;  %v102_v33 = vld [vmem:[#allocation6 + $0x50] sm:$0xff]  ;;  %v101_v34 = vld [vmem:[#allocation6 + $0x48] sm:$0xff]  ;;  %v103_v35 = vld [vmem:[#allocation6 + $0x58] sm:$0xff] }
  0x40   :  { %391 = vmatpush3.msra.mxu1 %v121_v17  ;;  %169 = vmatprep.subr.mxu0 %v117_v18  ;;  %v99_v36 = vld [vmem:[#allocation6 + $0x38] sm:$0xff]  ;;  %v98_v37 = vld [vmem:[#allocation6 + $0x30] sm:$0xff]  ;;  %v100_v38 = vld [vmem:[#allocation6 + $0x40] sm:$0xff] }
  0x41   :  { %392 = vmatprep.subr.mxu1 %v533_v0  ;;  %170 = vmatpush1.msra.mxu0 %v116_v19  ;;  %v96_v39 = vld [vmem:[#allocation6 + $0x20] sm:$0xff]  ;;  %v95_v40 = vld [vmem:[#allocation6 + $0x18] sm:$0xff]  ;;  %v97_v41 = vld [vmem:[#allocation6 + $0x28] sm:$0xff] }
  0x42   :  { %393 = vmatpush3.msra.mxu1 %v118_v20  ;;  %171 = vmatprep.subr.mxu0 %v114_v21  ;;  %v93_v42 = vld [vmem:[#allocation6 + $0x8] sm:$0xff]  ;;  %v92_v43 = vld [vmem:[#allocation6] sm:$0xff]  ;;  %v94_v44 = vld [vmem:[#allocation6 + $0x10] sm:$0xff] }
  0x43   :  { %394 = vmatprep.subr.mxu1 %v533_v0  ;;  %172 = vmatpush1.msra.mxu0 %v113_v22  ;;  %v68_v46 = vld [vmem:[#allocation4] sm:$0xff]  ;;  %v85_v50 = vld [vmem:[#allocation2] sm:$0xff]  ;;  %v134_v56 = vld [vmem:[#allocation7] sm:$0x7] }
  0x44   :  { %395 = vmatpush3.msra.mxu1 %v115_v23  ;;  %173 = vmatprep.subr.mxu0 %v111_v24  ;;  %v147_v57 = vrot.slane %v134_v56, %v146_v55  ;;  %v139_v62 = vrot.slane %v134_v56, %v138_v61  ;;  %v143_v8 = vrot.slane %v134_v56, %v142_v7 }
  0x45   :  { %396 = vmatprep.subr.mxu1 %v533_v0  ;;  %174 = vmatpush1.msra.mxu0 %v110_v25 }
  0x46   :  { %397 = vmatpush3.msra.mxu1 %v112_v26  ;;  %175 = vmatprep.subr.mxu0 %v108_v27 }
  0x47   :  { %398 = vmatprep.subr.mxu1 %v533_v0  ;;  %176 = vmatpush1.msra.mxu0 %v107_v28 }
  0x48   :  { %399 = vmatpush3.msra.mxu1 %v109_v29  ;;  %177 = vmatprep.subr.mxu0 %v105_v30 }
  0x49   :  { %400 = vmatprep.subr.mxu1 %v533_v0  ;;  %178 = vmatpush1.msra.mxu0 %v104_v31 }
  0x4a   :  { %401 = vmatpush3.msra.mxu1 %v106_v32  ;;  %179 = vmatprep.subr.mxu0 %v102_v33 }
  0x4b   :  { %402 = vmatprep.subr.mxu1 %v533_v0  ;;  %180 = vmatpush1.msra.mxu0 %v101_v34 }
  0x4c   :  { %403 = vmatpush3.msra.mxu1 %v103_v35  ;;  %181 = vmatprep.subr.mxu0 %v99_v36 }
  0x4d   :  { %404 = vmatprep.subr.mxu1 %v533_v0  ;;  %182 = vmatpush1.msra.mxu0 %v98_v37 }
  0x4e   :  { %405 = vmatpush3.msra.mxu1 %v100_v38  ;;  %183 = vmatprep.subr.mxu0 %v96_v39 }
  0x4f   :  { %406 = vmatprep.subr.mxu1 %v533_v0  ;;  %184 = vmatpush1.msra.mxu0 %v95_v40 }
  0x50   :  { %407 = vmatpush3.msra.mxu1 %v97_v41  ;;  %185 = vmatprep.subr.mxu0 %v93_v42 }
  0x51   :  { %408 = vmatprep.subr.mxu1 %v533_v0  ;;  %186 = vmatpush1.msra.mxu0 %v92_v43 }
  0x52   :  { %409 = vmatpush3.msra.mxu1 %v94_v44  ;;  %410 = vmatprep.mubr.msk.f32.mxu1 %vm536_vm0, %v533_v0 }
  0xa8   :  { %v75_v45 = vpop.permute.xlu0 %74 }
  0xa9   :  { %v82_v47 = vsel %vm81_vm1, %v68_v46, %v75_v45 }
  0xac   :  { %v79_v48 = vpop.permute.xlu0 %78 }
  0xad   :  { %v84_v49 = vsel %vm83_vm2, %v82_v47, %v79_v48 }
  0xae   :  { %87 = vrot.lane.b32.xlu1 %v84_v49, %s537_s12 }
 0x120   :  { %v88_v51 = vpop.permute.xlu1 %87 }
 0x121   :  { %v91_v52 = vsel %vm90_vm3, %v85_v50, %v88_v51 }
 0x122   :  { %361 = vmatmul.mubr.msk.f32.vlgmr.msra.gmra.mxu0 %vm151_vm4, %v91_v52  ;;  %411 = vmatmul.mubr.msk.f32.vlgmr.msra.gmra.mxu1 %vm151_vm4, %v91_v52 }
 0x1e2   :  { %v292_v58 = vpop.f32.mrf.mxu1  ;;  %v221_v63 = vpop.f32.mrf.mxu0 }
 0x1e3   :  { %v293_v59 = vadd.f32 %v292_v58, %v147_v57  ;;  %v222_v0 = vadd.f32 %v221_v63, %v139_v62 }
 0x1e4   :  { %v412_v60 = vpop.f32.mrf.mxu1  ;;  %v223_v9 = vpop.f32.mrf.mxu0 }
 0x1e5   :  { %309 = vrot.lane.b32.xlu1 %v293_v59, %s538_s13  ;;  %v363_v1 = vmul.f32 -1.442695, %v222_v0  ;;  %v224_v10 = vadd.f32 %v223_v9, %v143_v8 }
 0x1e7   :  { %427 = vpow2.f32 %v363_v1  ;;  %v364_v16 = vmul.f32 -1.442695, %v224_v10 }
 0x1f4   :  { %v428_v2 = vpop.eup %427 }
 0x1f5   :  { %v299_v3 = vadd.f32 1.0, %v428_v2 }
 0x1f7   :  { %429 = vrcp.f32 %v299_v3 }
 0x204   :  { %v430_v4 = vpop.eup %429 }
 0x205   :  { %v321_v23 = vsub.f32 1.0, %v430_v4 }
 0x257   :  { %v310_v5 = vpop.permute.xlu1 %309 }
 0x258   :  { %v312_v6 = vmul.f32 %v430_v4, %v310_v5 }
 0x25a   :  { %314 = vrot.lane.b32.xlu0 %v312_v6, %s535_s3 }
 0x2cc   :  { %v315_v11 = vpop.permute.xlu0 %314 }
 0x2cd   :  { %v317_v12 = vadd.f32 %v315_v11, %v224_v10  ;;  %v318_v13 = vadd.f32 %v315_v11, %v293_v59 }
 0x2cf   :  { %431 = vtanh.f32 %v317_v12 }
 0x2d0   :  { %433 = vtanh.f32 %v318_v13 }
 0x2d1   :  { %435 = vpow2.f32 %v364_v16 }
 0x2dc   :  { %v432_v14 = vpop.eup %431 }
 0x2dd   :  { %v434_v15 = vpop.eup %433  ;;  %325 = vrot.lane.b32.xlu1 %v432_v14, %s534_s2 }
 0x2de   :  { %327 = vrot.lane.b32.xlu0 %v434_v15, %s534_s2  ;;  %v436_v17 = vpop.eup %435 }
 0x2df   :  { %v305_v18 = vadd.f32 1.0, %v436_v17 }
 0x2e1   :  { %334 = vrot.lane.b32.xlu1 %v84_v49, %s538_s13  ;;  %437 = vrcp.f32 %v305_v18 }
 0x2ee   :  { %v438_v19 = vpop.eup %437 }
 0x2ef   :  { %v322_v24 = vsub.f32 1.0, %v438_v19 }
 0x34f   :  { %v326_v20 = vpop.permute.xlu1 %325 }
 0x350   :  { %v328_v21 = vpop.permute.xlu0 %327  ;;  %v332_v26 = vmul.f32 %v326_v20, %v321_v23 }
 0x351   :  { %v329_v22 = vsel %vm81_vm1, %v326_v20, %v328_v21 }
 0x352   :  { %v333_v27 = vmul.f32 %v329_v22, %v322_v24 }
 0x353   :  { %v335_v25 = vpop.permute.xlu1 %334 }
 0x354   :  { %v337_v28 = vmul.f32 %v430_v4, %v335_v25  ;;  %v338_v29 = vmul.f32 %v438_v19, %v335_v25 }
 0x356   :  { %v339_v30 = vadd.f32 %v337_v28, %v332_v26  ;;  %v340_v31 = vadd.f32 %v338_v29, %v333_v27 }
 0x358   :  { %365 = vst.msk [vmem:[%s619_s4 + $0x8] sm:$0xff] %vm81_vm1, %v340_v31  ;;  %349 = vrot.lane.b32.xlu1 %v340_v31, %s538_s13  ;;  %342 = vrot.lane.b32.xlu0 %v339_v30, %s534_s2 }
 0x3ca   :  { %v350_v32 = vpop.permute.xlu1 %349  ;;  %v343_v33 = vpop.permute.xlu0 %342 }
 0x3cb   :  { %366 = vst.msk [vmem:[%s619_s4 + $0x10] sm:$0xff] %vm81_vm1, %v350_v32  ;;  %345 = vst.msk [vmem:[%s619_s4] sm:$0xff] %vm81_vm1, %v343_v33 }
 0x3cc   :  { %358 = vsyncpa [#allocation3], 1 }
 0x3cd   :  { %359 = vsyncpa [#allocation5], 1 }
 0x3ce   :  { %360 = vsyncpa [#allocation8], 1 }

</bundles_post_ra>
